<compile_context>
chip_gen: v6e
topology: v6e:2x2x1
jax: 0.10.0
libtpu: 0.0.40
codegen_flags: <defaults>
</compile_context>

<pallas_src>
import functools

import jax
import jax.numpy as jnp
from jax.experimental import pallas as pl
from jax.experimental.pallas import tpu as pltpu

LANE = 128


def _rup(x, m):
    return (x + m - 1) // m * m


def _layout(state_space, action_space, hidden):
    """Row offsets (multiples of 8) of each section inside the packed weight buffer."""
    S, A, H = state_space, action_space, hidden
    C = _rup(H, LANE)            # activation (hidden) lane width
    C_out = _rup(S, LANE)        # output lane width (decoupled from C)
    W = max(C, C_out)            # packed-buffer lane width
    S8 = _rup(S, 8)
    A8 = _rup(A, 8)
    offs = {}
    offs["w1"] = 0                               # (S8, C)   valid [S, H]
    offs["w2"] = S8                              # (C,  C)   valid [H, H]
    offs["w3s"] = offs["w2"] + C                 # (C,  C)   valid [H, H]
    offs["w3a"] = offs["w3s"] + C                # (A8, C)   valid [A, H]
    offs["wo"] = offs["w3a"] + A8                # (C,  C_out) valid [H, S]
    offs["b"] = offs["wo"] + C                   # 4 bias rows: b1, b2, b3, bo
    R = offs["b"] + 8
    return offs, C, C_out, W, R


def _fdm_kernel(state_ref, action_ref, wp_ref, out_ref, *, S8, A8, C, C_out, offs):
    """relu(L1) -> relu(L2) -> relu(L3 + one_hot(action) @ W3a) -> output."""
    x = state_ref[...]                                            # (TB, S8) f32
    act = action_ref[...]                                         # (TB, 1)  i32
    b_row = offs["b"]

    def hidden_linear(h, w_off, w_rows, b_idx):
        w = wp_ref[w_off:w_off + w_rows, :C]                      # VMEM-resident slice
        bias = wp_ref[b_row + b_idx:b_row + b_idx + 1, :C]        # (1, C)
        return jnp.dot(h, w, preferred_element_type=jnp.float32) + bias

    h1 = jnp.maximum(hidden_linear(x, offs["w1"], S8, 0), 0.0)    # (TB, C)
    h2 = jnp.maximum(hidden_linear(h1, offs["w2"], C, 1), 0.0)    # (TB, C)

    # one_hot(action) @ W3_action on the MXU (tiny K = A8 matmul, frees the VALU slot).
    iota = jax.lax.broadcasted_iota(jnp.int32, (act.shape[0], A8), 1)
    oh = (act == iota).astype(jnp.float32)                        # (TB, A8)
    a_contrib = jnp.dot(oh, wp_ref[offs["w3a"]:offs["w3a"] + A8, :C],
                        preferred_element_type=jnp.float32)       # (TB, C)

    h3 = jnp.maximum(hidden_linear(h2, offs["w3s"], C, 2) + a_contrib, 0.0)

    wo = wp_ref[offs["wo"]:offs["wo"] + C, :C_out]                # (C, C_out)
    bo = wp_ref[b_row + 3:b_row + 4, :C_out]                      # (1, C_out)
    out_ref[...] = (jnp.dot(h3, wo, preferred_element_type=jnp.float32) + bo
                    ).astype(out_ref.dtype)


def pack_params(params, state_space, action_space, hidden):
    """Pack all weights/biases into one lane-dense (R, W) f32 buffer (zero-padded)."""
    offs, C, C_out, W, R = _layout(state_space, action_space, hidden)
    buf = jnp.zeros((R, W), jnp.float32)

    def put(b, row, arr):
        arr = jnp.asarray(arr, jnp.float32)
        r, c = arr.shape
        return b.at[row:row + r, :c].set(arr)

    buf = put(buf, offs["w1"], params["w1"])                      # (S, H)
    buf = put(buf, offs["w2"], params["w2"])                      # (H, H)
    buf = put(buf, offs["w3s"], params["w3s"])                    # (H, H)
    buf = put(buf, offs["w3a"], params["w3a"])                    # (A, H)
    buf = put(buf, offs["wo"], params["wo"])                      # (H, S)
    buf = put(buf, offs["b"] + 0, params["b1"].reshape(1, -1))
    buf = put(buf, offs["b"] + 1, params["b2"].reshape(1, -1))
    buf = put(buf, offs["b"] + 2, params["b3"].reshape(1, -1))
    buf = put(buf, offs["b"] + 3, params["bo"].reshape(1, -1))
    return buf


def forward_dynamics_pallas(current_state, action, packed, dims):
    """current_state: (bs, S) f32; action: (bs,) int; packed: packed weight buffer."""
    S, A, H = dims
    offs, C, C_out, W, R = _layout(S, A, H)
    assert packed.shape == (R, W), (packed.shape, (R, W))
    S8 = _rup(S, 8)
    A8 = _rup(A, 8)

    bs = current_state.shape[0]

    # Adaptive batch tiling: few fat tiles (amortize ~0.35 us/grid-step overhead), nearly
    # equal 8-aligned sizes (minimal tail padding), and >= 2 grid steps when there is
    # enough work so v7x can shard tiles across its 2 TensorCores.
    TB_MAX = 512
    n_tiles = pl.cdiv(bs, TB_MAX)
    if bs >= 64:
        n_tiles = max(n_tiles, 2)
    TB = _rup(pl.cdiv(bs, n_tiles), 8)
    bs_pad = TB * n_tiles

    state_in = current_state.astype(jnp.float32)
    if bs_pad != bs or S8 != S:
        state_in = jnp.pad(state_in, ((0, bs_pad - bs), (0, S8 - S)))
    action_in = action.astype(jnp.int32)
    if bs_pad != bs:
        action_in = jnp.pad(action_in, (0, bs_pad - bs))
    action2d = action_in.reshape(bs_pad, 1)

    kernel = functools.partial(_fdm_kernel, S8=S8, A8=A8, C=C, C_out=C_out, offs=offs)

    out = pl.pallas_call(
        kernel,
        out_shape=jax.ShapeDtypeStruct((bs_pad, C_out), jnp.float32),
        grid=(n_tiles,),
        in_specs=[
            pl.BlockSpec((TB, S8), lambda i: (i, 0)),             # streamed state tile
            pl.BlockSpec((TB, 1), lambda i: (i, 0)),              # streamed action tile
            pl.BlockSpec((R, W), lambda i: (0, 0)),               # packed weights, resident
        ],
        out_specs=pl.BlockSpec((TB, C_out), lambda i: (i, 0)),    # lane-dense output tile
        compiler_params=pltpu.CompilerParams(
            dimension_semantics=("parallel",),
            vmem_limit_bytes=32 * 1024 * 1024),
    )(state_in, action2d, packed)

    return out[:bs, :S]


# ---------------------------------------------------------------------------
# Parameter construction + pure-JAX reference (for correctness checking)
# ---------------------------------------------------------------------------

def _xavier_uniform(key, fan_in, fan_out):
    bound = jnp.sqrt(6.0 / (fan_in + fan_out))
    return jax.random.uniform(key, (fan_in, fan_out), jnp.float32, -bound, bound)


def _linear_default_bias(key, fan_in, fan_out):
    bound = 1.0 / jnp.sqrt(float(fan_in))
    return jax.random.uniform(key, (1, fan_out), jnp.float32, -bound, bound)


def make_params(key, state_space, action_space, hidden):
    keys = jax.random.split(key, 10)
    w3_full = _xavier_uniform(keys[4], hidden + action_space, hidden)   # (H+A, H)
    return {
        "w1": _xavier_uniform(keys[0], state_space, hidden),
        "b1": _linear_default_bias(keys[1], state_space, hidden),
        "w2": _xavier_uniform(keys[2], hidden, hidden),
        "b2": _linear_default_bias(keys[3], hidden, hidden),
        "w3s": w3_full[:hidden, :],
        "w3a": w3_full[hidden:, :],
        "b3": _linear_default_bias(keys[5], hidden + action_space, hidden),
        "wo": _xavier_uniform(keys[6], hidden, state_space),
        "bo": _linear_default_bias(keys[7], hidden, state_space),
    }


def reference_forward(current_state, action, params):
    x = jnp.maximum(current_state @ params["w1"] + params["b1"], 0.0)
    x = jnp.maximum(x @ params["w2"] + params["b2"], 0.0)
    a_dim = params["w3a"].shape[0]
    ac = jax.nn.one_hot(action, a_dim, dtype=jnp.float32)
    x = jnp.maximum(x @ params["w3s"] + ac @ params["w3a"] + params["b3"], 0.0)
    return x @ params["wo"] + params["bo"]


def _run_case(key, dims, bs, tag):
    S, A, H = dims
    k_params, k_state, k_action = jax.random.split(key, 3)
    params = make_params(k_params, S, A, H)
    packed = pack_params(params, S, A, H)
    current_state = jax.random.normal(k_state, (bs, S), jnp.float32)
    action = jax.random.randint(k_action, (bs,), 0, A, jnp.int32)
    out = jax.block_until_ready(
        forward_dynamics_pallas(current_state, action, packed, dims))
    ref = reference_forward(current_state, action, params)
    assert out.shape == (bs, S), (tag, out.shape)
    assert jnp.allclose(out, ref, atol=1e-4, rtol=1e-4), f"mismatch ({tag})"


if __name__ == "__main__":
    key = jax.random.PRNGKey(0)
    k1, k2, k3 = jax.random.split(key, 3)

    # Small batch, single grid step.
    _run_case(k1, dims=(16, 4, 32), bs=8, tag="bs=8")

    # Non-multiple batch: exercises adaptive tiling (grid=2, TB=152, bs_pad=304).
    _run_case(k2, dims=(16, 4, 32), bs=300, tag="bs=300")

    # Unaligned feature dims: exercises S->rup(S,8) and A->rup(A,8) padding paths.
    _run_case(k3, dims=(20, 3, 40), bs=70, tag="unaligned dims")

    print("KERNEL_OK")
</pallas_src>

<mosaic_0001>
module attributes {stable_mosaic.version = 11 : i64} {
  func.func @_fdm_kernel(%arg0: i32, %arg1: memref<8x16xf32, #tpu.memory_space<vmem>>, %arg2: memref<8x1xi32, #tpu.memory_space<vmem>>, %arg3: memref<416x128xf32, #tpu.memory_space<vmem>>, %arg4: memref<8x128xf32, #tpu.memory_space<vmem>>) attributes {dimension_semantics = [#tpu.dimension_semantics<parallel>], iteration_bounds = array<i64: 1>, scalar_prefetch = 0 : i64, scratch_operands = 0 : i64, tpu.core_type = #tpu.core_type<tc>, window_params = [{transform_indices = @transform_0, window_bounds = array<i64: 8, 16>}, {transform_indices = @transform_1, window_bounds = array<i64: 8, 1>}, {pipeline_mode = #tpu.pipeline_mode<synchronous>, transform_indices = @transform_2, window_bounds = array<i64: 416, 128>}, {transform_indices = @transform_3, window_bounds = array<i64: 8, 128>}]} {
    %c0 = arith.constant 0 : index
    %c0_0 = arith.constant 0 : index
    %0 = vector.load %arg1[%c0, %c0_0] : memref<8x16xf32, #tpu.memory_space<vmem>>, vector<8x16xf32>
    %c0_1 = arith.constant 0 : index
    %c0_2 = arith.constant 0 : index
    %1 = vector.load %arg2[%c0_1, %c0_2] : memref<8x1xi32, #tpu.memory_space<vmem>>, vector<8x1xi32>
    %c0_3 = arith.constant 0 : index
    %c0_4 = arith.constant 0 : index
    %2 = vector.load %arg3[%c0_3, %c0_4] : memref<416x128xf32, #tpu.memory_space<vmem>>, vector<16x128xf32>
    %c408 = arith.constant 408 : index
    %c0_5 = arith.constant 0 : index
    %3 = vector.load %arg3[%c408, %c0_5] : memref<416x128xf32, #tpu.memory_space<vmem>>, vector<1x128xf32>
    %cst = arith.constant dense<0.000000e+00> : vector<8x128xf32>
    %4 = tpu.matmul %0, %2, %cst {dimension_numbers = #tpu.dot_dimension_numbers<[1], [0], [0], [1], [0, 0, 1, 1], [], []>} : vector<8x16xf32>, vector<16x128xf32>, vector<8x128xf32> -> vector<8x128xf32>
    %5 = vector.broadcast %3 : vector<1x128xf32> to vector<8x128xf32>
    %6 = arith.addf %4, %5 : vector<8x128xf32>
    %cst_6 = arith.constant 0.000000e+00 : f32
    %7 = vector.broadcast %cst_6 : f32 to vector<8x128xf32>
    %8 = arith.maximumf %6, %7 : vector<8x128xf32>
    %c16 = arith.constant 16 : index
    %c0_7 = arith.constant 0 : index
    %9 = vector.load %arg3[%c16, %c0_7] : memref<416x128xf32, #tpu.memory_space<vmem>>, vector<128x128xf32>
    %c409 = arith.constant 409 : index
    %c0_8 = arith.constant 0 : index
    %10 = vector.load %arg3[%c409, %c0_8] : memref<416x128xf32, #tpu.memory_space<vmem>>, vector<1x128xf32>
    %cst_9 = arith.constant dense<0.000000e+00> : vector<8x128xf32>
    %11 = tpu.matmul %8, %9, %cst_9 {dimension_numbers = #tpu.dot_dimension_numbers<[1], [0], [0], [1], [0, 0, 1, 1], [], []>} : vector<8x128xf32>, vector<128x128xf32>, vector<8x128xf32> -> vector<8x128xf32>
    %12 = vector.broadcast %10 : vector<1x128xf32> to vector<8x128xf32>
    %13 = arith.addf %11, %12 : vector<8x128xf32>
    %cst_10 = arith.constant 0.000000e+00 : f32
    %14 = vector.broadcast %cst_10 : f32 to vector<8x128xf32>
    %15 = arith.maximumf %13, %14 : vector<8x128xf32>
    %16 = tpu.iota {dimensions = array<i32: 1>} : vector<8x8xi32>
    %17 = vector.broadcast %1 : vector<8x1xi32> to vector<8x8xi32>
    %18 = arith.cmpi eq, %17, %16 : vector<8x8xi32>
    %19 = arith.extui %18 : vector<8x8xi1> to vector<8x8xi32>
    %20 = arith.sitofp %19 : vector<8x8xi32> to vector<8x8xf32>
    %c272 = arith.constant 272 : index
    %c0_11 = arith.constant 0 : index
    %21 = vector.load %arg3[%c272, %c0_11] : memref<416x128xf32, #tpu.memory_space<vmem>>, vector<8x128xf32>
    %cst_12 = arith.constant dense<0.000000e+00> : vector<8x128xf32>
    %22 = tpu.matmul %20, %21, %cst_12 {dimension_numbers = #tpu.dot_dimension_numbers<[1], [0], [0], [1], [0, 0, 1, 1], [], []>} : vector<8x8xf32>, vector<8x128xf32>, vector<8x128xf32> -> vector<8x128xf32>
    %c144 = arith.constant 144 : index
    %c0_13 = arith.constant 0 : index
    %23 = vector.load %arg3[%c144, %c0_13] : memref<416x128xf32, #tpu.memory_space<vmem>>, vector<128x128xf32>
    %c410 = arith.constant 410 : index
    %c0_14 = arith.constant 0 : index
    %24 = vector.load %arg3[%c410, %c0_14] : memref<416x128xf32, #tpu.memory_space<vmem>>, vector<1x128xf32>
    %cst_15 = arith.constant dense<0.000000e+00> : vector<8x128xf32>
    %25 = tpu.matmul %15, %23, %cst_15 {dimension_numbers = #tpu.dot_dimension_numbers<[1], [0], [0], [1], [0, 0, 1, 1], [], []>} : vector<8x128xf32>, vector<128x128xf32>, vector<8x128xf32> -> vector<8x128xf32>
    %26 = vector.broadcast %24 : vector<1x128xf32> to vector<8x128xf32>
    %27 = arith.addf %25, %26 : vector<8x128xf32>
    %28 = arith.addf %27, %22 : vector<8x128xf32>
    %cst_16 = arith.constant 0.000000e+00 : f32
    %29 = vector.broadcast %cst_16 : f32 to vector<8x128xf32>
    %30 = arith.maximumf %28, %29 : vector<8x128xf32>
    %c280 = arith.constant 280 : index
    %c0_17 = arith.constant 0 : index
    %31 = vector.load %arg3[%c280, %c0_17] : memref<416x128xf32, #tpu.memory_space<vmem>>, vector<128x128xf32>
    %c411 = arith.constant 411 : index
    %c0_18 = arith.constant 0 : index
    %32 = vector.load %arg3[%c411, %c0_18] : memref<416x128xf32, #tpu.memory_space<vmem>>, vector<1x128xf32>
    %cst_19 = arith.constant dense<0.000000e+00> : vector<8x128xf32>
    %33 = tpu.matmul %30, %31, %cst_19 {dimension_numbers = #tpu.dot_dimension_numbers<[1], [0], [0], [1], [0, 0, 1, 1], [], []>} : vector<8x128xf32>, vector<128x128xf32>, vector<8x128xf32> -> vector<8x128xf32>
    %34 = vector.broadcast %32 : vector<1x128xf32> to vector<8x128xf32>
    %35 = arith.addf %33, %34 : vector<8x128xf32>
    %c0_20 = arith.constant 0 : index
    %c0_21 = arith.constant 0 : index
    %36 = vector.load %arg4[%c0_20, %c0_21] : memref<8x128xf32, #tpu.memory_space<vmem>>, vector<8x128xf32>
    tpu.vector_store %arg4[%c0_20, %c0_21], %35 {strides = array<i32>} : memref<8x128xf32, #tpu.memory_space<vmem>>, vector<8x128xf32>,
    return
  }
  func.func @transform_0(%arg0: i32) -> (i32, i32) {
    %c0_i32 = arith.constant 0 : i32
    %c0_i32_0 = arith.constant 0 : i32
    return %arg0, %c0_i32 : i32, i32
  }
  func.func @transform_1(%arg0: i32) -> (i32, i32) {
    %c0_i32 = arith.constant 0 : i32
    %c0_i32_0 = arith.constant 0 : i32
    return %arg0, %c0_i32 : i32, i32
  }
  func.func @transform_2(%arg0: i32) -> (i32, i32) {
    %c0_i32 = arith.constant 0 : i32
    %c0_i32_0 = arith.constant 0 : i32
    %c0_i32_1 = arith.constant 0 : i32
    return %c0_i32, %c0_i32_0 : i32, i32
  }
  func.func @transform_3(%arg0: i32) -> (i32, i32) {
    %c0_i32 = arith.constant 0 : i32
    %c0_i32_0 = arith.constant 0 : i32
    return %arg0, %c0_i32 : i32, i32
  }
}

</mosaic_0001>

<bundles_post_ra>
// kernel: tpu_custom_call.1
= control target key start
LH: loop header
LB: loop body
LE: loop exit
PB: predicated region body
PF: predicated region fallthrough
CT: control target
= control target key end

     0   :  { %8 = vsyncpa [#allocation3], 0  ;;  %s821_s0 = inlined_call_operand.vmem [shape: f32[8,16], index: 0, kind: input, shape index: {}]   ;;  %s822_s1 = inlined_call_operand.vmem [shape: s32[8,1], index: 1, kind: input, shape index: {}]   ;;  %s823_s2 = inlined_call_operand.hbm [shape: f32[416,128], index: 2, kind: input, shape index: {}]   ;;  %s824_s3 = inlined_call_operand.hbm [shape: f32[8,128], index: 3, kind: output, shape index: {}]  }
   0x1   :  { %9 = vsyncpa [#allocation4], 0  ;;  %s720_s12 = smov [#allocation2]  }
   0x2   :  { %s19_s13 = sshll.u32 %s720_s12, 4  ;;  %s20_s13 = int_to_ptr.vmem [resolvable:$true] %s19_s13 }
   0x3   :  { %s684_s14 = scalar_lea.vmem %s20_s13, 6656  ;;  %p689_p1 = scmp.lt.s32.totalorder %s20_s13, %s20_s13 }
   0x4   :  { %p685_p0 = scmp.ne.s32.totalorder %s20_s13, %s684_s14  ;;  %p690_p2 = scmp.lt.s32.totalorder %s684_s14, %s684_s14 }
   0x6   :  { %p691_p3 = por %p690_p2, %p689_p1 }
   0x8   :  { %p692_p4 = pnand %p691_p3, %p685_p0 }
   0xa   :  { %695 = shalt.err (!%p692_p4)
}
   0xb   :  { %s721_s15 = smov 128   ;;  %s722_s16 = smov 8  }
   0xc   :  { %25 = dma.hbm_to_vmem [thread:$0]  %s823_s2, 6656, %s20_s13, [#allocation3], %s721_s15, %s721_s15, %s722_s16  }
   0xd   :  { %716 = dma.done.wait [#allocation3], 6656  }
   0xe   :  { %717 = vsyncadd [#allocation3], 4294960640  ;;  %v723_v0 = vmov 0.0   ;;  %vm724_vm0 = vmmov 0   ;;  %v32_v1 = vld [vmem:[#allocation2 + $0x8] sm:$0xff]  ;;  %v31_v2 = vld [vmem:[#allocation2] sm:$0xff]  ;;  %v205_v23 = vlaneseq }
   0xf   :  { %551 = vmatprep.subr.mxu0 %v723_v0  ;;  %555 = vmatprep.mubr.msk.f32.mxu0 %vm724_vm0, %v723_v0  ;;  %v29_v3 = vld [vmem:[%s821_s0] sm:$0xff]  ;;  %vm38_vm1 = vcmask 130048   ;;  %v128_v4 = vld [vmem:[#allocation2 + $0x88] sm:$0xff]  ;;  %v126_v6 = vld [vmem:[#allocation2 + $0x78] sm:$0xff]  ;;  %v725_v22 = vmov 0   ;;  %vm214_vm2 = vcmask 64512  }
  0x10   :  { %558 = vmatprep.subr.mxu1 %v723_v0  ;;  %590 = vmatprep.mubr.msk.f32.mxu1 %vm724_vm0, %v723_v0  ;;  %v127_v5 = vld [vmem:[#allocation2 + $0x80] sm:$0xff]  ;;  %v125_v7 = vld [vmem:[#allocation2 + $0x70] sm:$0xff]  ;;  %v124_v8 = vld [vmem:[#allocation2 + $0x68] sm:$0xff]  ;;  %v206_v25 = vand.u32 127, %v205_v23 }
  0x11   :  { %552 = vmatpush3.msra.mxu0 %v32_v1  ;;  %559 = vmatpush3.msra.mxu1 %v128_v4  ;;  %v123_v9 = vld [vmem:[#allocation2 + $0x60] sm:$0xff]  ;;  %v122_v10 = vld [vmem:[#allocation2 + $0x58] sm:$0xff]  ;;  %v121_v11 = vld [vmem:[#allocation2 + $0x50] sm:$0xff] }
  0x12   :  { %553 = vmatprep.subr.mxu0 %v723_v0  ;;  %560 = vmatprep.subr.mxu1 %v723_v0  ;;  %v120_v12 = vld [vmem:[#allocation2 + $0x48] sm:$0xff]  ;;  %v119_v13 = vld [vmem:[#allocation2 + $0x40] sm:$0xff]  ;;  %v118_v14 = vld [vmem:[#allocation2 + $0x38] sm:$0xff] }
  0x13   :  { %554 = vmatpush3.msra.mxu0 %v31_v2  ;;  %561 = vmatpush3.msra.mxu1 %v127_v5  ;;  %v117_v15 = vld [vmem:[#allocation2 + $0x30] sm:$0xff]  ;;  %v116_v16 = vld [vmem:[#allocation2 + $0x28] sm:$0xff]  ;;  %v115_v17 = vld [vmem:[#allocation2 + $0x20] sm:$0xff] }
  0x14   :  { %556 = vmatmul.mubr.msk.f32.vlgmr.msra.gmra.mxu0 %vm38_vm1, %v29_v3  ;;  %562 = vmatprep.subr.mxu1 %v723_v0  ;;  %v114_v18 = vld [vmem:[#allocation2 + $0x18] sm:$0xff]  ;;  %v113_v19 = vld [vmem:[#allocation2 + $0x10] sm:$0xff]  ;;  %v30_v20 = vld [vmem:[%s822_s1] sm:$0xff]  ;;  %s726_s1 = smov [#allocation5]  }
  0x15   :  { %593 = vmatprep.subr.mxu0 %v723_v0  ;;  %563 = vmatpush3.msra.mxu1 %v126_v6  ;;  %v213_v21 = vld [vmem:[#allocation2 + $0x110] sm:$0xff]  ;;  %v488_v24 = vld [vmem:[#allocation2 + $0x198] ss:$0 sm:$0xff]  ;;  %v303_v31 = vld [vmem:[#allocation2 + $0x108] sm:$0xff]  ;;  %s479_s21 = sshll.u32 %s726_s1, 4  ;;  %s480_s21 = int_to_ptr.vmem [resolvable:$true] %s479_s21 }
  0x16   :  { %595 = vmatprep.mubr.msk.f32.mxu0 %vm724_vm0, %v723_v0  ;;  %564 = vmatprep.subr.mxu1 %v723_v0  ;;  %v302_v33 = vld [vmem:[#allocation2 + $0x100] sm:$0xff]  ;;  %v301_v34 = vld [vmem:[#allocation2 + $0xf8] sm:$0xff]  ;;  %v300_v35 = vld [vmem:[#allocation2 + $0xf0] sm:$0xff]  ;;  %s696_s22 = scalar_lea.vmem %s480_s21, 128  ;;  %p701_p6 = scmp.lt.s32.totalorder %s480_s21, %s480_s21 }
  0x17   :  { %565 = vmatpush3.msra.mxu1 %v125_v7  ;;  %675 = vset.pattern.permute.xlu0 %v725_v22  ;;  %v299_v36 = vld [vmem:[#allocation2 + $0xe8] sm:$0xff]  ;;  %v298_v37 = vld [vmem:[#allocation2 + $0xe0] sm:$0xff]  ;;  %v297_v38 = vld [vmem:[#allocation2 + $0xd8] sm:$0xff]  ;;  %p697_p5 = scmp.ne.s32.totalorder %s480_s21, %s696_s22  ;;  %p702_p7 = scmp.lt.s32.totalorder %s696_s22, %s696_s22 }
  0x18   :  { %566 = vmatprep.subr.mxu1 %v723_v0  ;;  %594 = vmatpush3.msra.mxu0 %v213_v21  ;;  %v296_v39 = vld [vmem:[#allocation2 + $0xd0] sm:$0xff]  ;;  %v295_v40 = vld [vmem:[#allocation2 + $0xc8] sm:$0xff]  ;;  %v294_v41 = vld [vmem:[#allocation2 + $0xc0] sm:$0xff] }
  0x19   :  { %567 = vmatpush3.msra.mxu1 %v124_v8  ;;  %208 = vperm.xlu0 %675, %v30_v20   ;;  %v293_v42 = vld [vmem:[#allocation2 + $0xb8] sm:$0xff]  ;;  %v292_v43 = vld [vmem:[#allocation2 + $0xb0] sm:$0xff]  ;;  %v291_v44 = vld [vmem:[#allocation2 + $0xa8] sm:$0xff]  ;;  %p703_p8 = por %p702_p7, %p701_p6 }
  0x1a   :  { %568 = vmatprep.subr.mxu1 %v723_v0  ;;  %598 = vmatprep.subr.mxu0 %v723_v0  ;;  %v290_v45 = vld [vmem:[#allocation2 + $0xa0] sm:$0xff]  ;;  %v289_v46 = vld [vmem:[#allocation2 + $0x98] sm:$0xff]  ;;  %v288_v47 = vld [vmem:[#allocation2 + $0x90] sm:$0xff] }
  0x1b   :  { %569 = vmatpush3.msra.mxu1 %v123_v9  ;;  %v396_v48 = vld [vmem:[#allocation2 + $0x190] sm:$0xff]  ;;  %v395_v49 = vld [vmem:[#allocation2 + $0x188] sm:$0xff]  ;;  %v394_v50 = vld [vmem:[#allocation2 + $0x180] sm:$0xff]  ;;  %p704_p9 = pnand %p703_p8, %p697_p5 }
  0x1c   :  { %570 = vmatprep.subr.mxu1 %v723_v0  ;;  %v393_v51 = vld [vmem:[#allocation2 + $0x178] sm:$0xff]  ;;  %v392_v52 = vld [vmem:[#allocation2 + $0x170] sm:$0xff]  ;;  %v391_v53 = vld [vmem:[#allocation2 + $0x168] sm:$0xff] }
  0x1d   :  { %571 = vmatpush3.msra.mxu1 %v122_v10  ;;  %v390_v54 = vld [vmem:[#allocation2 + $0x160] sm:$0xff]  ;;  %v389_v55 = vld [vmem:[#allocation2 + $0x158] sm:$0xff]  ;;  %v388_v56 = vld [vmem:[#allocation2 + $0x150] sm:$0xff] }
  0x1e   :  { %572 = vmatprep.subr.mxu1 %v723_v0  ;;  %v387_v57 = vld [vmem:[#allocation2 + $0x148] sm:$0xff]  ;;  %v386_v58 = vld [vmem:[#allocation2 + $0x140] sm:$0xff]  ;;  %v385_v59 = vld [vmem:[#allocation2 + $0x138] sm:$0xff] }
  0x1f   :  { %573 = vmatpush3.msra.mxu1 %v121_v11  ;;  %v490_v60 = vld [vmem:[#allocation2 + $0x199] ss:$0 sm:$0xff]  ;;  %v384_v4 = vld [vmem:[#allocation2 + $0x130] sm:$0xff]  ;;  %v383_v5 = vld [vmem:[#allocation2 + $0x128] sm:$0xff] }
  0x20   :  { %574 = vmatprep.subr.mxu1 %v723_v0  ;;  %v382_v6 = vld [vmem:[#allocation2 + $0x120] sm:$0xff]  ;;  %v381_v7 = vld [vmem:[#allocation2 + $0x118] sm:$0xff] }
  0x21   :  { %575 = vmatpush3.msra.mxu1 %v120_v12  ;;  %v493_v8 = vld [vmem:[#allocation2 + $0x19a] ss:$0 sm:$0xff] }
  0x22   :  { %576 = vmatprep.subr.mxu1 %v723_v0 }
  0x23   :  { %577 = vmatpush3.msra.mxu1 %v119_v13 }
  0x24   :  { %578 = vmatprep.subr.mxu1 %v723_v0 }
  0x25   :  { %579 = vmatpush3.msra.mxu1 %v118_v14  ;;  %v494_v14 = vld [vmem:[#allocation2 + $0x19b] ss:$0 sm:$0xff] }
  0x26   :  { %580 = vmatprep.subr.mxu1 %v723_v0 }
  0x27   :  { %581 = vmatpush3.msra.mxu1 %v117_v15 }
  0x28   :  { %582 = vmatprep.subr.mxu1 %v723_v0 }
  0x29   :  { %583 = vmatpush3.msra.mxu1 %v116_v16 }
  0x2a   :  { %584 = vmatprep.subr.mxu1 %v723_v0 }
  0x2b   :  { %585 = vmatpush3.msra.mxu1 %v115_v17 }
  0x2c   :  { %586 = vmatprep.subr.mxu1 %v723_v0 }
  0x2d   :  { %587 = vmatpush3.msra.mxu1 %v114_v18 }
  0x2e   :  { %588 = vmatprep.subr.mxu1 %v723_v0 }
  0x2f   :  { %589 = vmatpush3.msra.mxu1 %v113_v19 }
  0x30   :  { %633 = vmatprep.subr.mxu1 %v723_v0 }
  0x94   :  { %v209_v29 = vpop.permute.xlu0 %208 }
  0x95   :  { %vm210_vm3 = vcmp.eq.s32.totalorder %v209_v29, %v206_v25 }
  0x96   :  { %v491_v32 = vsel %vm210_vm3, 1.0, %v723_v0 }
  0x97   :  { %596 = vmatmul.mubr.msk.f32.vlgmr.msra.gmra.mxu0 %vm214_vm2, %v491_v32 }
  0x98   :  { %599 = vmatpush3.msra.mxu0 %v303_v31  ;;  %630 = vmatprep.mubr.msk.f32.mxu0 %vm724_vm0, %v723_v0 }
  0x99   :  { %600 = vmatprep.subr.mxu0 %v723_v0 }
  0x9a   :  { %601 = vmatpush3.msra.mxu0 %v302_v33 }
  0x9b   :  { %602 = vmatprep.subr.mxu0 %v723_v0 }
  0x9c   :  { %603 = vmatpush3.msra.mxu0 %v301_v34 }
  0x9d   :  { %604 = vmatprep.subr.mxu0 %v723_v0 }
  0x9e   :  { %605 = vmatpush3.msra.mxu0 %v300_v35 }
  0x9f   :  { %606 = vmatprep.subr.mxu0 %v723_v0 }
  0xa0   :  { %607 = vmatpush3.msra.mxu0 %v299_v36 }
  0xa1   :  { %608 = vmatprep.subr.mxu0 %v723_v0 }
  0xa2   :  { %609 = vmatpush3.msra.mxu0 %v298_v37 }
  0xa3   :  { %610 = vmatprep.subr.mxu0 %v723_v0 }
  0xa4   :  { %611 = vmatpush3.msra.mxu0 %v297_v38 }
  0xa5   :  { %612 = vmatprep.subr.mxu0 %v723_v0 }
  0xa6   :  { %613 = vmatpush3.msra.mxu0 %v296_v39 }
  0xa7   :  { %614 = vmatprep.subr.mxu0 %v723_v0 }
  0xa8   :  { %615 = vmatpush3.msra.mxu0 %v295_v40 }
  0xa9   :  { %616 = vmatprep.subr.mxu0 %v723_v0 }
  0xaa   :  { %617 = vmatpush3.msra.mxu0 %v294_v41 }
  0xab   :  { %618 = vmatprep.subr.mxu0 %v723_v0 }
  0xac   :  { %619 = vmatpush3.msra.mxu0 %v293_v42 }
  0xad   :  { %620 = vmatprep.subr.mxu0 %v723_v0 }
  0xae   :  { %621 = vmatpush3.msra.mxu0 %v292_v43 }
  0xaf   :  { %622 = vmatprep.subr.mxu0 %v723_v0 }
  0xb0   :  { %623 = vmatpush3.msra.mxu0 %v291_v44 }
  0xb1   :  { %624 = vmatprep.subr.mxu0 %v723_v0 }
  0xb2   :  { %625 = vmatpush3.msra.mxu0 %v290_v45 }
  0xb3   :  { %626 = vmatprep.subr.mxu0 %v723_v0 }
  0xb4   :  { %627 = vmatpush3.msra.mxu0 %v289_v46 }
  0xb5   :  { %628 = vmatprep.subr.mxu0 %v723_v0 }
  0xb6   :  { %629 = vmatpush3.msra.mxu0 %v288_v47 }
  0xd4   :  { %v108_v26 = vpop.f32.mrf.mxu0 }
  0xd5   :  { %v109_v27 = vadd.f32 %v488_v24, %v108_v26 }
  0xd6   :  { %v557_v28 = vpop.f32.mrf.mxu0 }
  0xd7   :  { %v112_v30 = vmax.f32 %v109_v27, 0.0 }
  0xd9   :  { %591 = vmatmul.mubr.f32.vlgmr.msra.gmra.mxu1 %v112_v30 }
  0xda   :  { %665 = vmatprep.mubr.msk.f32.mxu1 %vm724_vm0, %v723_v0  ;;  %634 = vmatpush3.msra.mxu1 %v396_v48 }
  0xdb   :  { %635 = vmatprep.subr.mxu1 %v723_v0 }
  0xdc   :  { %636 = vmatpush3.msra.mxu1 %v395_v49 }
  0xdd   :  { %637 = vmatprep.subr.mxu1 %v723_v0 }
  0xde   :  { %638 = vmatpush3.msra.mxu1 %v394_v50 }
  0xdf   :  { %639 = vmatprep.subr.mxu1 %v723_v0 }
  0xe0   :  { %640 = vmatpush3.msra.mxu1 %v393_v51 }
  0xe1   :  { %641 = vmatprep.subr.mxu1 %v723_v0 }
  0xe2   :  { %642 = vmatpush3.msra.mxu1 %v392_v52 }
  0xe3   :  { %643 = vmatprep.subr.mxu1 %v723_v0 }
  0xe4   :  { %644 = vmatpush3.msra.mxu1 %v391_v53 }
  0xe5   :  { %645 = vmatprep.subr.mxu1 %v723_v0 }
  0xe6   :  { %646 = vmatpush3.msra.mxu1 %v390_v54 }
  0xe7   :  { %647 = vmatprep.subr.mxu1 %v723_v0 }
  0xe8   :  { %648 = vmatpush3.msra.mxu1 %v389_v55 }
  0xe9   :  { %649 = vmatprep.subr.mxu1 %v723_v0 }
  0xea   :  { %650 = vmatpush3.msra.mxu1 %v388_v56 }
  0xeb   :  { %651 = vmatprep.subr.mxu1 %v723_v0 }
  0xec   :  { %652 = vmatpush3.msra.mxu1 %v387_v57 }
  0xed   :  { %653 = vmatprep.subr.mxu1 %v723_v0 }
  0xee   :  { %654 = vmatpush3.msra.mxu1 %v386_v58 }
  0xef   :  { %655 = vmatprep.subr.mxu1 %v723_v0 }
  0xf0   :  { %656 = vmatpush3.msra.mxu1 %v385_v59 }
  0xf1   :  { %657 = vmatprep.subr.mxu1 %v723_v0 }
  0xf2   :  { %658 = vmatpush3.msra.mxu1 %v384_v4 }
  0xf3   :  { %659 = vmatprep.subr.mxu1 %v723_v0 }
  0xf4   :  { %660 = vmatpush3.msra.mxu1 %v383_v5 }
  0xf5   :  { %661 = vmatprep.subr.mxu1 %v723_v0 }
  0xf6   :  { %662 = vmatpush3.msra.mxu1 %v382_v6 }
  0xf7   :  { %663 = vmatprep.subr.mxu1 %v723_v0 }
  0xf8   :  { %664 = vmatpush3.msra.mxu1 %v381_v7 }
 0x157   :  { %v284_v62 = vpop.f32.mrf.mxu0 }
 0x159   :  { %v597_v2 = vpop.f32.mrf.mxu0 }
 0x199   :  { %v200_v61 = vpop.f32.mrf.mxu1 }
 0x19a   :  { %v201_v63 = vadd.f32 %v490_v60, %v200_v61 }
 0x19b   :  { %v592_v1 = vpop.f32.mrf.mxu1 }
 0x19c   :  { %v204_v3 = vmax.f32 %v201_v63, 0.0 }
 0x19e   :  { %631 = vmatmul.mubr.f32.vlgmr.msra.gmra.mxu0 %v204_v3 }
 0x25e   :  { %v375_v9 = vpop.f32.mrf.mxu0 }
 0x25f   :  { %v376_v10 = vadd.f32 %v493_v8, %v375_v9 }
 0x260   :  { %v632_v11 = vpop.f32.mrf.mxu0 }
 0x261   :  { %v379_v12 = vadd.f32 %v376_v10, %v284_v62 }
 0x263   :  { %v380_v13 = vmax.f32 %v379_v12, 0.0 }
 0x265   :  { %666 = vmatmul.mubr.f32.vlgmr.msra.gmra.mxu1 %v380_v13 }
 0x325   :  { %v468_v15 = vpop.f32.mrf.mxu1 }
 0x326   :  { %v469_v16 = vadd.f32 %v494_v14, %v468_v15 }
 0x327   :  { %v667_v17 = vpop.f32.mrf.mxu1 }
 0x328   :  { %472 = vst [vmem:[#allocation5] sm:$0xff] %v469_v16 }
 0x329   :  { %707 = shalt.err (!%p704_p9)
}
 0x32a   :  { %482 = dma.vmem_to_hbm [thread:$0]  %s480_s21, 128, %s824_s3, [#allocation4]  }
 0x32b   :  { %718 = dma.done.wait [#allocation4], 128  }
 0x32c   :  { %719 = vsyncadd [#allocation4], 4294967168 }
 0x32d   :  { %486 = vsyncpa [#allocation3], 1 }
 0x32e   :  { %487 = vsyncpa [#allocation4], 1 }

</bundles_post_ra>
